<compile_context>
chip_gen: v7x
topology: tpu7x:2x2x1
jax: 0.10.0
libtpu: 0.0.40
codegen_flags: <defaults>
</compile_context>

<pallas_src>
import functools

import numpy as np
import jax
import jax.numpy as jnp
from jax import lax
from jax.experimental import pallas as pl
from jax.experimental.pallas import tpu as pltpu


# --------------------------------------------------------------------------- #
# In-kernel helpers
# --------------------------------------------------------------------------- #
def _banded_conv(xp_f32, w_ref, Nb, H, WC, mxu_dtype):
    """xp_f32: (Nb, H+2, W*C) f32 row-padded lane-flat input; w_ref: (3, W*C, W*C)
    bf16 banded weights ('SAME' W-padding folded in).  -> (Nb*H, W*C) f32 output."""
    acc = jnp.zeros((Nb * H, WC), jnp.float32)
    for ky in range(3):                                       # 3 banded matmuls, f32 acc
        lhs = xp_f32[:, ky:ky + H, :].reshape(Nb * H, WC).astype(mxu_dtype)
        acc = acc + jnp.dot(lhs, w_ref[ky], preferred_element_type=jnp.float32)
    return acc


def _partial_stats(acc, WC):
    """acc: (M, W*C) f32 -> (1, 2, W*C) rows [sum, sum of squares] (single sweep)."""
    return jnp.concatenate(
        [jnp.sum(acc, axis=0, keepdims=True),
         jnp.sum(acc * acc, axis=0, keepdims=True)], axis=0).reshape(1, 2, WC)


# --------------------------------------------------------------------------- #
# Pass 1: conv1 (banded matmul) + per-block batch statistics
# --------------------------------------------------------------------------- #
def _conv1_kernel(xp_ref, w_ref, y_ref, stat_ref, *, Nb, H, W, C, mxu_dtype):
    WC = W * C
    acc = _banded_conv(xp_ref[...], w_ref, Nb, H, WC, mxu_dtype)
    y_ref[...] = acc.reshape(Nb, H, WC).astype(y_ref.dtype)   # bf16 store
    stat_ref[...] = _partial_stats(acc, WC)


# --------------------------------------------------------------------------- #
# Pass 2: bn1 + relu + conv2 (banded matmul, padded VMEM scratch) + statistics
# --------------------------------------------------------------------------- #
def _bn_relu_conv2_kernel(y1_ref, a1_ref, w_ref, y2_ref, stat_ref, pad_ref,
                          *, Nb, H, W, C, mxu_dtype):
    WC = W * C
    scale = a1_ref[0:1, :].reshape(1, 1, WC)
    shift = a1_ref[1:2, :].reshape(1, 1, WC)
    h1 = jnp.maximum(y1_ref[...].astype(jnp.float32) * scale + shift, 0.0)
    # Persistent row-padded scratch: re-zero only the two border rows every step
    # (megacore-safe; no program_id==0 dependence), then overwrite the interior.
    zrow = jnp.zeros((Nb, 1, WC), jnp.float32)
    pad_ref[:, 0:1, :] = zrow
    pad_ref[:, H + 1:H + 2, :] = zrow
    pad_ref[:, 1:H + 1, :] = h1
    acc = _banded_conv(pad_ref[...], w_ref, Nb, H, WC, mxu_dtype)
    y2_ref[...] = acc.reshape(Nb, H, WC).astype(y2_ref.dtype)  # bf16 store
    stat_ref[...] = _partial_stats(acc, WC)


# --------------------------------------------------------------------------- #
# Pass 3: bn2 + residual + relu + maxpool (lane-dense flat output)
# --------------------------------------------------------------------------- #
def _bn_res_relu_pool_kernel(xp_ref, y2_ref, a2_ref, sel_ref, o_ref,
                             *, Nb, H, W, C, pool):
    WC = W * C
    Hp, Wp = H // pool, W // pool
    scale = a2_ref[0:1, :].reshape(1, 1, WC)
    shift = a2_ref[1:2, :].reshape(1, 1, WC)
    x_int = xp_ref[:, 1:H + 1, :]                             # interior = original x (f32)
    act = jnp.maximum(x_int + y2_ref[...].astype(jnp.float32) * scale + shift, 0.0)
    # H-pool: fold `pool` consecutive rows into lanes, pairwise max over contiguous
    # lane slices (no strided gathers).
    t = act.reshape(Nb * Hp, pool * WC)
    mh = t[:, 0:WC]
    for p in range(1, pool):
        mh = jnp.maximum(mh, t[:, p * WC:(p + 1) * WC])       # (Nb*Hp, W*C)
    # W-pool + lane compaction: exact 0/1 selection matmuls on the (idle) MXU.
    pooled = jnp.dot(mh, sel_ref[0], preferred_element_type=jnp.float32)
    for p in range(1, pool):
        pooled = jnp.maximum(
            pooled, jnp.dot(mh, sel_ref[p], preferred_element_type=jnp.float32))
    o_ref[...] = pooled.reshape(Nb, 1, Hp * Wp * C)           # lane-dense store


# --------------------------------------------------------------------------- #
# Host-side helpers
# --------------------------------------------------------------------------- #
def _band_weights(w_hwio, W):
    """(3,3,Cin,Cout) HWIO conv weights -> (3, W*Cin, W*Cout) banded matmul weights
    on the lane-flat layout; 'SAME' zero padding along W is folded into the band
    (out-of-range kx taps are simply absent)."""
    KH, KW, Cin, Cout = w_hwio.shape
    bands = []
    for ky in range(KH):
        acc = jnp.zeros((W * Cin, W * Cout), jnp.float32)
        for kx in range(KW):
            wout = np.arange(W)
            win = wout + kx - (KW // 2)
            valid = (win >= 0) & (win < W)
            e = np.zeros((W, W), np.float32)
            e[win[valid], wout[valid]] = 1.0
            tap = jnp.einsum('vw,io->viwo', jnp.asarray(e),
                             w_hwio[ky, kx].astype(jnp.float32))
            acc = acc + tap.reshape(W * Cin, W * Cout)
        bands.append(acc)
    return jnp.stack(bands, axis=0)


def _pool_select(W, C, pool):
    """0/1 selection matrices (pool, W*C, Wp*C): matrix p maps lane group
    (j*pool+p)*C..+C to output group j*C..+C (exact lane compaction via matmul)."""
    Wp = W // pool
    s = np.zeros((pool, W * C, Wp * C), np.float32)
    j = np.repeat(np.arange(Wp), C)
    c = np.tile(np.arange(C), Wp)
    for p in range(pool):
        s[p, (j * pool + p) * C + c, j * C + c] = 1.0
    return jnp.asarray(s)


def _pick_batch_block(N, H, W, C, vmem_budget=8 * 1024 * 1024):
    """Largest divisor of N whose (roughly double-buffered) per-block working set fits
    the budget, preferring >= 2 grid steps so both v7x TensorCores get work."""
    per_img = 2 * ((H + 2) * W * C * 4      # padded f32 input block
                   + (H + 2) * W * C * 4    # padded f32 scratch
                   + 2 * H * W * C * 2      # bf16 y1 / y2 blocks
                   + H * W * C * 4)         # f32 conv accumulator
    divs = [d for d in range(1, N + 1) if N % d == 0]
    fits = [d for d in divs if d * per_img <= vmem_budget] or [1]
    two_step = [d for d in fits if N // d >= 2]
    return max(two_step) if two_step else max(fits)


def _fold_bn(ps, gamma, beta, count, W, C, eps):
    """Fold per-block (sum, sumsq) partials into lane-flat (2, W*C) BN scale/shift."""
    s = ps[:, 0, :].reshape(-1, W, C).sum(axis=(0, 1))
    ss = ps[:, 1, :].reshape(-1, W, C).sum(axis=(0, 1))
    mean = s / count
    var = jnp.maximum(ss / count - mean * mean, 0.0)          # clamp f32 cancellation
    scale = gamma.reshape(-1) * lax.rsqrt(var + eps)
    shift = beta.reshape(-1) - mean * scale
    return jnp.tile(jnp.stack([scale, shift], axis=0), (1, W))   # (2, W*C)


# --------------------------------------------------------------------------- #
# Wrapper
# --------------------------------------------------------------------------- #
def res_conv2d_maxpool(x_nchw, params, pool=2, eps=1e-5,
                       mxu_dtype=jnp.bfloat16, batch_block=None):
    w1, b1, g1, be1, w2, b2, g2, be2 = params
    N, C_in, H, W = x_nchw.shape
    C = w1.shape[-1]
    assert C_in == C, "residual add requires matching channel counts"
    assert w1.shape[:2] == (3, 3) and w2.shape[:2] == (3, 3)
    assert H % pool == 0 and W % pool == 0
    Hp, Wp = H // pool, W // pool
    WC = W * C

    # Single lane-flat, row-padded copy of the input in HBM: pass 1 reads all rows,
    # pass 3 reads the interior rows 1..H for the residual (no duplicate copy).
    x_nhwc = jnp.transpose(x_nchw, (0, 2, 3, 1)).astype(jnp.float32)
    x_pad = jnp.pad(x_nhwc, ((0, 0), (1, 1), (0, 0), (0, 0))).reshape(N, H + 2, WC)

    w1b = _band_weights(w1, W).astype(mxu_dtype)               # (3, W*C, W*C)
    w2b = _band_weights(w2, W).astype(mxu_dtype)
    sel = _pool_select(W, C, pool)                             # (pool, W*C, Wp*C)
    # Conv biases cancel exactly under the training-mode BN mean subtraction.
    del b1, b2

    Nb = batch_block or _pick_batch_block(N, H, W, C)
    assert N % Nb == 0
    G = N // Nb

    cparams = pltpu.CompilerParams(
        dimension_semantics=("parallel",),        # batch blocks are independent
        # Per-block VMEM here is tiny; raise this (v6e up to ~96 MiB, v7x physical
        # is only 64 MiB) if Nb or H*W*C grows.
        vmem_limit_bytes=32 * 1024 * 1024,
    )

    # ---- pass 1: conv1 (banded matmul) + batch statistics -------------------
    y1, ps1 = pl.pallas_call(
        functools.partial(_conv1_kernel, Nb=Nb, H=H, W=W, C=C, mxu_dtype=mxu_dtype),
        out_shape=(jax.ShapeDtypeStruct((N, H, WC), mxu_dtype),
                   jax.ShapeDtypeStruct((G, 2, WC), jnp.float32)),
        grid=(G,),
        in_specs=[pl.BlockSpec((Nb, H + 2, WC), lambda n: (n, 0, 0)),
                  pl.BlockSpec((3, WC, WC), lambda n: (0, 0, 0))],
        out_specs=(pl.BlockSpec((Nb, H, WC), lambda n: (n, 0, 0)),
                   pl.BlockSpec((1, 2, WC), lambda n: (n, 0, 0))),
        compiler_params=cparams,
    )(x_pad, w1b)

    a1 = _fold_bn(ps1, g1, be1, float(N * H * W), W, C, eps)

    # ---- pass 2: bn1 + relu + conv2 (banded matmul) + statistics -------------
    y2, ps2 = pl.pallas_call(
        functools.partial(_bn_relu_conv2_kernel, Nb=Nb, H=H, W=W, C=C,
                          mxu_dtype=mxu_dtype),
        out_shape=(jax.ShapeDtypeStruct((N, H, WC), mxu_dtype),
                   jax.ShapeDtypeStruct((G, 2, WC), jnp.float32)),
        grid=(G,),
        in_specs=[pl.BlockSpec((Nb, H, WC), lambda n: (n, 0, 0)),
                  pl.BlockSpec((2, WC), lambda n: (0, 0)),
                  pl.BlockSpec((3, WC, WC), lambda n: (0, 0, 0))],
        out_specs=(pl.BlockSpec((Nb, H, WC), lambda n: (n, 0, 0)),
                   pl.BlockSpec((1, 2, WC), lambda n: (n, 0, 0))),
        scratch_shapes=[pltpu.VMEM((Nb, H + 2, WC), jnp.float32)],
        compiler_params=cparams,
    )(y1, a1, w2b)

    a2 = _fold_bn(ps2, g2, be2, float(N * H * W), W, C, eps)

    # ---- pass 3: bn2 + residual + relu + maxpool (lane-dense flat output) ----
    out_flat = pl.pallas_call(
        functools.partial(_bn_res_relu_pool_kernel, Nb=Nb, H=H, W=W, C=C, pool=pool),
        out_shape=jax.ShapeDtypeStruct((N, 1, Hp * Wp * C), jnp.float32),
        grid=(G,),
        in_specs=[pl.BlockSpec((Nb, H + 2, WC), lambda n: (n, 0, 0)),
                  pl.BlockSpec((Nb, H, WC), lambda n: (n, 0, 0)),
                  pl.BlockSpec((2, WC), lambda n: (0, 0)),
                  pl.BlockSpec((pool, WC, Wp * C), lambda n: (0, 0, 0))],
        out_specs=pl.BlockSpec((Nb, 1, Hp * Wp * C), lambda n: (n, 0, 0)),
        compiler_params=cparams,
    )(x_pad, y2, a2, sel)

    return out_flat.reshape(N, Hp, Wp, C).transpose(0, 3, 1, 2)   # back to NCHW


# --------------------------------------------------------------------------- #
# Pure-JAX reference (training-mode BN, SAME 3x3 conv, floor MaxPool2)
# --------------------------------------------------------------------------- #
def reference(x, w1, b1, g1, be1, w2, b2, g2, be2, pool=2, eps=1e-5):
    def conv(h, w, b):
        y = lax.conv_general_dilated(h, w, (1, 1), 'SAME',
                                     dimension_numbers=('NCHW', 'HWIO', 'NCHW'),
                                     precision=lax.Precision.HIGHEST)
        return y + b.reshape(1, -1, 1, 1)

    def bn(h, g, be):
        mean = jnp.mean(h, axis=(0, 2, 3), keepdims=True)
        var = jnp.mean((h - mean) ** 2, axis=(0, 2, 3), keepdims=True)
        return (h - mean) * lax.rsqrt(var + eps) * g.reshape(1, -1, 1, 1) \
            + be.reshape(1, -1, 1, 1)

    out = bn(conv(jax.nn.relu(bn(conv(x, w1, b1), g1, be1)), w2, b2), g2, be2)
    out = jax.nn.relu(x + out)
    N, C, H, W = out.shape
    return out.reshape(N, C, H // pool, pool, W // pool, pool).max(axis=(3, 5))


if __name__ == "__main__":
    N, C, H, W, pool = 2, 4, 16, 16, 2

    key = jax.random.PRNGKey(0)
    kx, k1, kb1, k2, kb2 = jax.random.split(key, 5)
    x = jax.random.normal(kx, (N, C, H, W), jnp.float32)
    # conv weights in HWIO layout (3,3,Cin,Cout); BN gamma=1, beta=0 (PyTorch init).
    w1 = jax.random.normal(k1, (3, 3, C, C), jnp.float32) * 0.1
    b1 = jax.random.normal(kb1, (1, C), jnp.float32) * 0.1
    w2 = jax.random.normal(k2, (3, 3, C, C), jnp.float32) * 0.1
    b2 = jax.random.normal(kb2, (1, C), jnp.float32) * 0.1
    g1 = jnp.ones((1, C), jnp.float32); be1 = jnp.zeros((1, C), jnp.float32)
    g2 = jnp.ones((1, C), jnp.float32); be2 = jnp.zeros((1, C), jnp.float32)
    params = (w1, b1, g1, be1, w2, b2, g2, be2)

    out = res_conv2d_maxpool(x, params, pool=pool)
    out = jax.block_until_ready(out)

    ref = reference(x, *params, pool=pool)
    assert out.shape == (N, C, H // pool, W // pool), out.shape
    # bf16 MXU operands + bf16 y1/y2 storage (f32 accumulation / stats / BN / pool)
    # bound the error at ~1% relative through the two conv+BN stages.
    err = float(jnp.max(jnp.abs(out - ref)))
    assert jnp.allclose(out, ref, atol=2e-2, rtol=2e-2), err

    print("KERNEL_OK")
</pallas_src>

<mosaic_0001>
module attributes {stable_mosaic.version = 11 : i64} {
  func.func @_conv1_kernel(%arg0: i32, %arg1: memref<1x18x64xf32, #tpu.memory_space<vmem>>, %arg2: memref<3x64x64xbf16, #tpu.memory_space<vmem>>, %arg3: memref<1x16x64xbf16, #tpu.memory_space<vmem>>, %arg4: memref<1x2x64xf32, #tpu.memory_space<vmem>>) attributes {dimension_semantics = [#tpu.dimension_semantics<parallel>], iteration_bounds = array<i64: 2>, scalar_prefetch = 0 : i64, scratch_operands = 0 : i64, tpu.core_type = #tpu.core_type<tc>, window_params = [{transform_indices = @transform_0, window_bounds = array<i64: 1, 18, 64>}, {pipeline_mode = #tpu.pipeline_mode<synchronous>, transform_indices = @transform_1, window_bounds = array<i64: 3, 64, 64>}, {transform_indices = @transform_2, window_bounds = array<i64: 1, 16, 64>}, {transform_indices = @transform_3, window_bounds = array<i64: 1, 2, 64>}]} {
    %c0 = arith.constant 0 : index
    %c0_0 = arith.constant 0 : index
    %c0_1 = arith.constant 0 : index
    %0 = vector.load %arg1[%c0, %c0_0, %c0_1] : memref<1x18x64xf32, #tpu.memory_space<vmem>>, vector<1x18x64xf32>
    %cst = arith.constant 0.000000e+00 : f32
    %1 = vector.broadcast %cst : f32 to vector<16x64xf32>
    %2 = vector.extract_strided_slice %0 {offsets = [0, 0, 0], sizes = [1, 16, 64], strides = [1, 1, 1]} : vector<1x18x64xf32> to vector<1x16x64xf32>
    %3 = vector.shape_cast %2 : vector<1x16x64xf32> to vector<16x64xf32>
    %4 = arith.truncf %3 : vector<16x64xf32> to vector<16x64xbf16>
    %c0_2 = arith.constant 0 : index
    %c0_3 = arith.constant 0 : index
    %c0_4 = arith.constant 0 : index
    %5 = vector.load %arg2[%c0_2, %c0_3, %c0_4] : memref<3x64x64xbf16, #tpu.memory_space<vmem>>, vector<1x64x64xbf16>
    %6 = vector.shape_cast %5 : vector<1x64x64xbf16> to vector<64x64xbf16>
    %cst_5 = arith.constant dense<0.000000e+00> : vector<16x64xf32>
    %7 = tpu.matmul %4, %6, %cst_5 {dimension_numbers = #tpu.dot_dimension_numbers<[1], [0], [0], [1], [0, 0, 1, 1], [], []>} : vector<16x64xbf16>, vector<64x64xbf16>, vector<16x64xf32> -> vector<16x64xf32>
    %8 = arith.addf %1, %7 : vector<16x64xf32>
    %9 = vector.extract_strided_slice %0 {offsets = [0, 1, 0], sizes = [1, 16, 64], strides = [1, 1, 1]} : vector<1x18x64xf32> to vector<1x16x64xf32>
    %10 = vector.shape_cast %9 : vector<1x16x64xf32> to vector<16x64xf32>
    %11 = arith.truncf %10 : vector<16x64xf32> to vector<16x64xbf16>
    %c1 = arith.constant 1 : index
    %c0_6 = arith.constant 0 : index
    %c0_7 = arith.constant 0 : index
    %12 = vector.load %arg2[%c1, %c0_6, %c0_7] : memref<3x64x64xbf16, #tpu.memory_space<vmem>>, vector<1x64x64xbf16>
    %13 = vector.shape_cast %12 : vector<1x64x64xbf16> to vector<64x64xbf16>
    %cst_8 = arith.constant dense<0.000000e+00> : vector<16x64xf32>
    %14 = tpu.matmul %11, %13, %cst_8 {dimension_numbers = #tpu.dot_dimension_numbers<[1], [0], [0], [1], [0, 0, 1, 1], [], []>} : vector<16x64xbf16>, vector<64x64xbf16>, vector<16x64xf32> -> vector<16x64xf32>
    %15 = arith.addf %8, %14 : vector<16x64xf32>
    %16 = vector.extract_strided_slice %0 {offsets = [0, 2, 0], sizes = [1, 16, 64], strides = [1, 1, 1]} : vector<1x18x64xf32> to vector<1x16x64xf32>
    %17 = vector.shape_cast %16 : vector<1x16x64xf32> to vector<16x64xf32>
    %18 = arith.truncf %17 : vector<16x64xf32> to vector<16x64xbf16>
    %c2 = arith.constant 2 : index
    %c0_9 = arith.constant 0 : index
    %c0_10 = arith.constant 0 : index
    %19 = vector.load %arg2[%c2, %c0_9, %c0_10] : memref<3x64x64xbf16, #tpu.memory_space<vmem>>, vector<1x64x64xbf16>
    %20 = vector.shape_cast %19 : vector<1x64x64xbf16> to vector<64x64xbf16>
    %cst_11 = arith.constant dense<0.000000e+00> : vector<16x64xf32>
    %21 = tpu.matmul %18, %20, %cst_11 {dimension_numbers = #tpu.dot_dimension_numbers<[1], [0], [0], [1], [0, 0, 1, 1], [], []>} : vector<16x64xbf16>, vector<64x64xbf16>, vector<16x64xf32> -> vector<16x64xf32>
    %22 = arith.addf %15, %21 : vector<16x64xf32>
    %23 = vector.shape_cast %22 : vector<16x64xf32> to vector<1x16x64xf32>
    %24 = arith.truncf %23 : vector<1x16x64xf32> to vector<1x16x64xbf16>
    %c0_12 = arith.constant 0 : index
    %c0_13 = arith.constant 0 : index
    %c0_14 = arith.constant 0 : index
    %25 = vector.load %arg3[%c0_12, %c0_13, %c0_14] : memref<1x16x64xbf16, #tpu.memory_space<vmem>>, vector<1x16x64xbf16>
    tpu.vector_store %arg3[%c0_12, %c0_13, %c0_14], %24 {strides = array<i32>} : memref<1x16x64xbf16, #tpu.memory_space<vmem>>, vector<1x16x64xbf16>,
    %cst_15 = arith.constant dense<0.000000e+00> : vector<64xf32>
    %26 = vector.multi_reduction <add>, %22, %cst_15 [0] : vector<16x64xf32> to vector<64xf32>
    %27 = vector.shape_cast %26 : vector<64xf32> to vector<1x64xf32>
    %28 = arith.mulf %22, %22 : vector<16x64xf32>
    %cst_16 = arith.constant dense<0.000000e+00> : vector<64xf32>
    %29 = vector.multi_reduction <add>, %28, %cst_16 [0] : vector<16x64xf32> to vector<64xf32>
    %30 = vector.shape_cast %29 : vector<64xf32> to vector<1x64xf32>
    %31 = tpu.concatenate %27, %30 in 0 : vector<1x64xf32>, vector<1x64xf32> -> vector<2x64xf32>
    %32 = vector.shape_cast %31 : vector<2x64xf32> to vector<1x2x64xf32>
    %c0_17 = arith.constant 0 : index
    %c0_18 = arith.constant 0 : index
    %c0_19 = arith.constant 0 : index
    %33 = vector.load %arg4[%c0_17, %c0_18, %c0_19] : memref<1x2x64xf32, #tpu.memory_space<vmem>>, vector<1x2x64xf32>
    tpu.vector_store %arg4[%c0_17, %c0_18, %c0_19], %32 {strides = array<i32>} : memref<1x2x64xf32, #tpu.memory_space<vmem>>, vector<1x2x64xf32>,
    return
  }
  func.func @transform_0(%arg0: i32) -> (i32, i32, i32) {
    %c0_i32 = arith.constant 0 : i32
    %c0_i32_0 = arith.constant 0 : i32
    %c0_i32_1 = arith.constant 0 : i32
    return %arg0, %c0_i32, %c0_i32_0 : i32, i32, i32
  }
  func.func @transform_1(%arg0: i32) -> (i32, i32, i32) {
    %c0_i32 = arith.constant 0 : i32
    %c0_i32_0 = arith.constant 0 : i32
    %c0_i32_1 = arith.constant 0 : i32
    %c0_i32_2 = arith.constant 0 : i32
    return %c0_i32, %c0_i32_0, %c0_i32_1 : i32, i32, i32
  }
  func.func @transform_2(%arg0: i32) -> (i32, i32, i32) {
    %c0_i32 = arith.constant 0 : i32
    %c0_i32_0 = arith.constant 0 : i32
    %c0_i32_1 = arith.constant 0 : i32
    return %arg0, %c0_i32, %c0_i32_0 : i32, i32, i32
  }
  func.func @transform_3(%arg0: i32) -> (i32, i32, i32) {
    %c0_i32 = arith.constant 0 : i32
    %c0_i32_0 = arith.constant 0 : i32
    %c0_i32_1 = arith.constant 0 : i32
    return %arg0, %c0_i32, %c0_i32_0 : i32, i32, i32
  }
}

</mosaic_0001>

<bundles_post_ra>
// kernel: tpu_custom_call.1
= control target key start
LH: loop header
LB: loop body
LE: loop exit
PB: predicated region body
PF: predicated region fallthrough
CT: control target
= control target key end

     0   :  { %9 = vsyncpa [#allocation3], 0  ;;  %s1131_s0 = inlined_call_operand.vmem [shape: f32[2,18,64], index: 0, kind: input, shape index: {}]   ;;  %s1132_s1 = inlined_call_operand.hbm [shape: bf16[3,64,64], index: 1, kind: input, shape index: {}]   ;;  %s1133_s2 = inlined_call_operand.hbm [shape: bf16[2,16,64], index: 2, kind: output, shape index: {0}]   ;;  %s1134_s3 = inlined_call_operand.hbm [shape: f32[2,2,64], index: 3, kind: output, shape index: {1}]  }
   0x1   :  { %10 = vsyncpa [#allocation4], 0 }
   0x2   :  { %12 = vsyncpa [#allocation4 + $0x1], 0 }
   0x3   :  { %13 = vsyncpa [#allocation7], 0 }
   0x4   :  { %15 = vsyncpa [#allocation7 + $0x1], 0  ;;  %s949_s12 = smov 0   ;;  %s951_s13 = smov 0  }
   0x5   :  { %s953_s14 = smov 0   ;;  %s955_s15 = smov 0  }
   0x6 LB: > { %s970_s16 = sadd.s32 4294967295, %s918_s15   ;;  %s625_s17 = sadd.s32 4294967294, %s918_s15   ;;  %s918_s15 = sphi %s955_s15, %s1150_s15   ;;  %s914_s14 = sphi %s953_s14, %s1149_s14   ;;  %s910_s13 = sphi %s951_s13, %s1148_s13   ;;  %s906_s12 = sphi %s949_s12, %s1147_s12  }
   0x7   : > { %s974_s18 = sadd.s32 1, %s918_s15   ;;  %s75_s19 = sadd.s32 1, %s914_s14 }
   0x8   : > { %s72_s20 = ssub.s32 %s918_s15, %s974_s18  ;;  %p85_p0 = scmp.ne.s32.totalorder %s914_s14, %s910_s13 }
   0x9   : > { %p73_p1 = scmp.eq.s32.totalorder %s72_s20, 0  ;;  %p86_p2 = scmp.eq.s32.totalorder %s970_s16, 1 }
   0xa   : > { %p91_p3 = scmp.ne.s32.totalorder %s910_s13, %s906_s12  ;;  %p92_p4 = scmp.eq.s32.totalorder %s625_s17, 1 }
   0xb   : > { %s985_s21 = scalar_select %p73_p1, %s914_s14, %s75_s19  }
   0xc   : > { %p987_p5 = por %p86_p2, %p85_p0  ;;  %p991_p6 = por %p92_p4, %p91_p3 }
   0xd   : > { %p626_p7 = scmp.ge.s32.totalorder %s918_s15, 1  ;;  %p125_p8 = scmp.lt.s32.totalorder %s918_s15, 3 }
   0xe   : > { %s1138_s22 = scalar_select %p987_p5, 1, 0 }
   0xf   : > { %s1139_s23 = scalar_select %p991_p6, 1, 0 }
  0x10   : > { %p1135_p9 = scmp.eq.s32.totalorder %s970_s16, 0  ;;  %p998_p10 = pnand %p626_p7, %p125_p8 }
  0x11   : > { %s920_s25 = smov [#allocation2]   ;;  %s792_s30 = scalar_lea.hbm %s1132_s1, 1536 }
  0x12   : > { %s1140_s24 = scalar_select %p998_p10, 1, 0 }
  0x13   : > { %s137_s26 = sshll.u32 %s920_s25, 4  ;;  %p727_p11 = pneg %p998_p10  ;;  %s138_s26 = int_to_ptr.vmem [resolvable:$true] %s137_s26 }
  0x14   : > { %p793_p13 = scmp.ne.s32.totalorder %s1132_s1, %s792_s30  ;;  %p799_p3 = scmp.lt.u32.totalorder %s792_s30, %s1132_s1 }
  0x15   : > { %p1006_p12 = pnand %p1135_p9, %p727_p11 }
  0x17   : > { %p794_p0 = pneg %p1006_p12 }
  0x19   : > { %p795_p1 = pnand %p794_p0, %p793_p13 }
  0x1b   : > { %p796_p2 = pneg %p795_p1 }
  0x1d   : > { %p801_p4 = pnand %p799_p3, %p796_p2 }
  0x1f   : > { %804 = shalt.err (!%p801_p4)
}
  0x20   : > { %s805_s8 = scalar_lea.vmem %s138_s26, 1536  ;;  %p813_p9 = scmp.lt.s32.totalorder %s138_s26, %s138_s26 }
  0x21   : > { %p806_p7 = scmp.ne.s32.totalorder %s138_s26, %s805_s8  ;;  %p814_p6 = scmp.lt.s32.totalorder %s805_s8, %s805_s8 }
  0x23   : > { %p808_p8 = pnand %p806_p7, %p794_p0  ;;  %p815_p5 = por %p814_p6, %p813_p9 }
  0x25   : > { %p809_p11 = pneg %p808_p8 }
  0x27   : > { %p816_p10 = pnand %p815_p5, %p809_p11 }
  0x29   : > { %819 = shalt.err (!%p816_p10)
}
  0x2a   : > { %s921_s9 = smov 64   ;;  %s922_s10 = smov 4  }
  0x2b   : > { %730 = dma.hbm_to_vmem [thread:$0]  (!%p1006_p12), %s1132_s1, 1536, %s138_s26, [#allocation3], %s921_s9, %s921_s9, %s922_s10  }
  0x2c   : > { %p1142_p13 = scmp.ne.s32.totalorder %s1140_s24, 0 }
  0x2d   : > { %p1143_p1 = scmp.eq.s32.totalorder (!%p1142_p13), %s970_s16, 0 }
  0x2e   : > { %161 = sbr.rel (%p1142_p13) target bundleno = 347 (0x15b), region = 28 }
  0x35   : > { %893 = dma.done.wait (%p1143_p1), [#allocation3], 1536   ;;  %p1144_p0 = pmov %p1143_p1 }
  0x36   : > { %p190_p5 = scmp.lt.s32.totalorder %s970_s16, 1  ;;  %v923_v0 = vmov 0.0   ;;  %vm924_vm0 = vmmov 0   ;;  %v780_v1 = vld [vmem:[#allocation2] sm:$0xff]   ;;  %v781_v2 = vld [vmem:[#allocation2 + $0x8] sm:$0xff]   ;;  %v782_v6 = vld [vmem:[#allocation2 + $0x10] sm:$0xff]  }
  0x37   : > { %895 = vsyncadd (%p1144_p0), [#allocation3], 4294965760  ;;  %688 = vmatprep.subr.bf16.mxu0 %v923_v0  ;;  %676 = vmatprep.subr.bf16.mxu1 %v923_v0  ;;  %v784_v3 = vld [vmem:[#allocation2 + $0x20] sm:$0xff]   ;;  %v786_v8 = vld [vmem:[#allocation2 + $0x28] sm:$0xff]   ;;  %vm255_vm1 = vcmask 523264   ;;  %vm378_vm3 = vcmask 1046528  }
  0x38   : > { %696 = vmatprep.mubr.msk.bf16.mxu0 %vm924_vm0, %v923_v0  ;;  %s191_s19 = scalar_select %p190_p5, %s970_s16, 1  ;;  %684 = vmatprep.mubr.msk.bf16.mxu1 %vm924_vm0, %v923_v0  ;;  %v783_v9 = vld [vmem:[#allocation2 + $0x18] sm:$0xff]   ;;  %v788_v11 = vld [vmem:[#allocation2 + $0x30] sm:$0xff]   ;;  %v785_v16 = vld [vmem:[#allocation2 + $0x40] sm:$0xff]   ;;  %vm218_vm2 = vsmask.f32 7424 }
  0x39   : > { %689 = vmatpush3.bf16.msra.mxu0 %v780_v1  ;;  %677 = vmatpush3.bf16.msra.mxu1 %v784_v3  ;;  %v790_v17 = vld [vmem:[#allocation2 + $0x38] sm:$0xff]   ;;  %v787_v21 = vld [vmem:[#allocation2 + $0x48] sm:$0xff]   ;;  %v789_v23 = vld [vmem:[#allocation2 + $0x50] sm:$0xff]   ;;  %s1044_s27 = sand.u32 1, %s910_s13   ;;  %s660_s29 = sshll.u32 %s970_s16, 7  ;;  %vm460_vm4 = vcmask 519168  }
  0x3a   : > { %s718_s20 = smul.u32 24, %s191_s19  ;;  %690 = vmatprep.subr.bf16.mxu0 %v923_v0  ;;  %678 = vmatprep.subr.bf16.mxu1 %v923_v0  ;;  %v791_v24 = vld [vmem:[#allocation2 + $0x58] sm:$0xff]   ;;  %s631_s28 = sshll.u32 %s1044_s27, 3 }
  0x3b   : > { %s182_s30 = scalar_lea.vmem [#allocation5], %s631_s28  ;;  %s1051_s7 = scalar_lea.hbm %s1133_s2, %s660_s29 }
  0x3c   : > { %s194_s26 = scalar_lea.vmem %s1131_s0, %s718_s20  ;;  %s506_s4 = sshll.u32 %s182_s30, 4  ;;  %s1053_s4 = int_to_ptr.vmem [resolvable:$true] %s506_s4 }
  0x3d   : > { %v196_v4 = vld [vmem:[%s194_s26] sm:$0xff]  ;;  %v197_v5 = vld [vmem:[%s194_s26 + $0x8] sm:$0xff]  ;;  %691 = vmatpush3.bf16.msra.mxu0 %v781_v2  ;;  %679 = vmatpush3.bf16.msra.mxu1 %v786_v8  ;;  %v198_v13 = vld [vmem:[%s194_s26 + $0x10] sm:$0x3]  ;;  %s488_s8 = scalar_lea.sflag [#allocation4], %s1044_s27  ;;  %s820_s9 = scalar_lea.vmem %s1053_s4, 128 }
  0x3e   : > { %692 = vmatprep.subr.bf16.mxu0 %v923_v0  ;;  %v199_v7 = vpack.c.bf16 %v197_v5, %v196_v4  ;;  %680 = vmatprep.subr.bf16.mxu1 %v923_v0  ;;  %v208_v15 = vpack.c.bf16 %v198_v13, %v198_v13  ;;  %p821_p6 = scmp.ne.s32.totalorder %s1053_s4, %s820_s9  ;;  %p1145_p9 = scmp.ne.s32.totalorder %s1138_s22, 0 }
  0x3f   : > { %s925_s10 = smov [#allocation5]  }
  0x40   : > { %v222_v10 = vshll.u32 %v199_v7, 16  ;;  %v220_v12 = vshrl.u32 %v199_v7, 16  ;;  %v227_v19 = vshll.u32 %v208_v15, 16  ;;  %v379_v25 = vrot.slane %v199_v7, 1  ;;  %p822_p10 = pnand %p821_p6, %p1145_p9  ;;  %s824_s11 = sshll.u32 %s925_s10, 4  ;;  %s825_s11 = int_to_ptr.vmem [resolvable:$false] %s824_s11 }
  0x41   : > { %693 = vmatpush3.bf16.msra.mxu0 %v782_v6  ;;  %681 = vmatpush3.bf16.msra.mxu1 %v788_v11  ;;  %v380_v26 = vrot.slane %v208_v15, 1  ;;  %s826_s17 = scalar_lea.vmem %s825_s11, 256  ;;  %p827_p2 = scmp.lt.s32.totalorder %s1053_s4, %s825_s11 }
  0x42   : > { %694 = vmatprep.subr.bf16.mxu0 %v923_v0  ;;  %v224_v14 = vrot.slane %v222_v10, 1  ;;  %682 = vmatprep.subr.bf16.mxu1 %v923_v0  ;;  %v229_v20 = vrot.slane %v227_v19, 1  ;;  %p823_p12 = pneg %p822_p10  ;;  %p828_p3 = scmp.lt.s32.totalorder %s826_s17, %s820_s9 }
  0x43   : > { %v381_v27 = vsel %vm378_vm3, %v379_v25, %v380_v26 }
  0x44   : > { %v225_v18 = vor.u32 %v224_v14, %v220_v12  ;;  %p829_p4 = por %p828_p3, %p827_p2 }
  0x45   : > { %695 = vmatpush3.bf16.msra.mxu0 %v783_v9  ;;  %683 = vmatpush3.bf16.msra.mxu1 %v790_v17 }
  0x46   : > { %700 = vmatprep.subr.bf16.mxu0 %v923_v0  ;;  %v230_v22 = vsel %vm218_vm2, %v225_v18, %v229_v20  ;;  %p830_p7 = pnand %p829_p4, %p823_p12 }
  0x48   : > { %697 = vmatmul.mubr.msk.bf16.vlgmr.msra.gmra.mrb[0].mxu0 %vm255_vm1, %v199_v7  ;;  %685 = vmatmul.mubr.msk.bf16.vlgmr.msra.gmra.mrb[0].mxu1 %vm255_vm1, %v230_v22 }
  0x49   : > { %701 = vmatpush3.bf16.msra.mxu0 %v785_v16  ;;  %708 = vmatprep.mubr.msk.bf16.mxu0 %vm924_vm0, %v923_v0 }
  0x4a   : > { %702 = vmatprep.subr.bf16.mxu0 %v923_v0 }
  0x4d   : > { %703 = vmatpush3.bf16.msra.mxu0 %v787_v21 }
  0x4e   : > { %704 = vmatprep.subr.bf16.mxu0 %v923_v0 }
  0x51   : > { %705 = vmatpush3.bf16.msra.mxu0 %v789_v23 }
  0x52   : > { %706 = vmatprep.subr.bf16.mxu0 %v923_v0 }
  0x55   : > { %707 = vmatpush3.bf16.msra.mxu0 %v791_v24 }
  0x58   : > { %709 = vmatmul.mubr.msk.bf16.vlgmr.msra.gmra.mrb[0].mxu0 %vm255_vm1, %v381_v27 }
 0x11b   : > { %v293_v28 = vpop.f32.mrb[0].mxu1 }
 0x11c   : > { %v686_v29 = vpop.f32.mrb[1].mxu1 }
 0x11d   : > { %v296_v30 = vpop.f32.mrb[2].mxu1 }
 0x11e   : > { %v687_v31 = vpop.f32.mrb[3].mxu1 }
 0x12b   : > { %v443_v32 = vpop.f32.mrb[0].mxu0 }
 0x12c   : > { %v712_v33 = vadd.f32 %v443_v32, %v293_v28  ;;  %v710_v34 = vpop.f32.mrb[1].mxu0 }
 0x12d   : > { %v446_v35 = vpop.f32.mrb[2].mxu0 }
 0x12e   : > { %v658_v36 = vpack.c.bf16 %v712_v33, %v712_v33  ;;  %v472_v37 = vmul.f32 %v712_v33, %v712_v33  ;;  %v713_v38 = vadd.f32 %v446_v35, %v296_v30  ;;  %v711_v39 = vpop.f32.mrb[3].mxu0  ;;  %v463_v40 = vsel %vm255_vm1, %v712_v33, 0.0 }
 0x130   : > { %461 = vst.msk [vmem:[%s182_s30] sm:$0xf] %vm460_vm4, %v658_v36  ;;  %v659_v41 = vpack.c.bf16 %v713_v38, %v713_v38  ;;  %v464_v42 = vsel %vm255_vm1, %v713_v38, 0.0  ;;  %v473_v43 = vmul.f32 %v713_v38, %v713_v38  ;;  %v474_v45 = vsel %vm255_vm1, %v472_v37, 0.0 }
 0x131   : > { %v465_v44 = vadd.f32 %v464_v42, %v463_v40 }
 0x132   : > { %462 = vst.msk [vmem:[%s182_s30 + $0x4] sm:$0xf] %vm460_vm4, %v659_v41  ;;  %v475_v46 = vsel %vm255_vm1, %v473_v43, 0.0 }
 0x133   : > { %v466_v47 = vrot.slane %v465_v44, 4  ;;  %v476_v48 = vadd.f32 %v475_v46, %v474_v45 }
 0x134   : > { %833 = shalt.err (!%p830_p7)
}
 0x135   : > { %s834_s19 = scalar_lea.hbm %s1051_s7, 128  ;;  %s838_s25 = scalar_lea.hbm %s1133_s2, 256 }
 0x136   : > { %p835_p8 = scmp.ne.s32.totalorder %s1051_s7, %s834_s19  ;;  %p839_p1 = scmp.lt.u32.totalorder %s1051_s7, %s1133_s2 }
 0x137   : > { %p840_p0 = scmp.lt.u32.totalorder %s838_s25, %s834_s19  ;;  %p842_p6 = scmp.lt.u32.totalorder %s834_s19, %s1051_s7 }
 0x138   : > { %p836_p11 = pnand %p835_p8, %p1145_p9 }
 0x139   : > { %p841_p5 = por %p840_p0, %p839_p1 }
 0x13a   : > { %p837_p13 = pneg %p836_p11 }
 0x13b   : > { %p843_p10 = por %p842_p6, %p841_p5 }
 0x13d   : > { %p844_p12 = pnand %p843_p10, %p837_p13 }
 0x13f   : > { %847 = shalt.err (!%p844_p12)
}
 0x140   : > { %s926_s29 = smov 64   ;;  %s927_s30 = smov 4   ;;  %v467_v49 = vadd.f32 %v466_v47, %v465_v44  ;;  %v477_v50 = vrot.slane %v476_v48, 4  ;;  %vm483_vm5 = vcmask 1040384   ;;  %vm485_vm6 = vcmask 517120  }
 0x141   : > { %723 = dma.vmem_to_hbm [thread:$0]  (%p1145_p9), %s1053_s4, 128, %s1051_s7, %s488_s8, %s926_s29, %s926_s29, %s927_s30  }
 0x142   : > { %v468_v51 = vrot.slane %v467_v49, 2  ;;  %v478_v52 = vadd.f32 %v477_v50, %v476_v48  ;;  %s632_s5 = sshll.u32 %s1044_s27, 1  ;;  %s655_s6 = sshll.u32 %s970_s16, 5 }
 0x143   : > { %s189_s9 = scalar_lea.vmem [#allocation6], %s632_s5  ;;  %s1088_s8 = scalar_lea.hbm %s1134_s3, %s655_s6 }
 0x144   : > { %v469_v53 = vadd.f32 %v468_v51, %v467_v49  ;;  %v479_v54 = vrot.slane %v478_v52, 2  ;;  %s522_s10 = sshll.u32 %s189_s9, 4  ;;  %s493_s11 = scalar_lea.sflag [#allocation7], %s1044_s27  ;;  %s1090_s10 = int_to_ptr.vmem [resolvable:$true] %s522_s10 }
 0x145   : > { %s848_s16 = scalar_lea.vmem %s1090_s10, 32  ;;  %s928_s17 = smov [#allocation6]  }
 0x146   : > { %v470_v55 = vrot.slane %v469_v53, 1  ;;  %v480_v56 = vadd.f32 %v479_v54, %v478_v52  ;;  %p849_p2 = scmp.ne.s32.totalorder %s1090_s10, %s848_s16  ;;  %s852_s19 = sshll.u32 %s928_s17, 4  ;;  %s853_s19 = int_to_ptr.vmem [resolvable:$false] %s852_s19 }
 0x147   : > { %s854_s20 = scalar_lea.vmem %s853_s19, 64  ;;  %p855_p7 = scmp.lt.s32.totalorder %s1090_s10, %s853_s19 }
 0x148   : > { %v481_v57 = vrot.slane %v480_v56, 1  ;;  %v471_v58 = vadd.f32 %v470_v55, %v469_v53  ;;  %p850_p3 = pnand %p849_p2, %p1145_p9  ;;  %p856_p8 = scmp.lt.s32.totalorder %s854_s20, %s848_s16 }
 0x14a   : > { %v482_v59 = vadd.f32 %v481_v57, %v480_v56  ;;  %p851_p4 = pneg %p850_p3  ;;  %p857_p11 = por %p856_p8, %p855_p7 }
 0x14c   : > { %v484_v60 = vsel %vm483_vm5, %v471_v58, %v482_v59  ;;  %p858_p13 = pnand %p857_p11, %p851_p4 }
 0x14d   : > { %486 = vst.msk [vmem:[%s189_s9] sm:$0x3] %vm485_vm6, %v484_v60 }
 0x14e   : > { %861 = shalt.err (!%p858_p13)
}
 0x14f   : > { %s862_s27 = scalar_lea.hbm %s1088_s8, 32  ;;  %s866_s26 = scalar_lea.hbm %s1134_s3, 64 }
 0x150   : > { %p863_p1 = scmp.ne.s32.totalorder %s1088_s8, %s862_s27  ;;  %p867_p6 = scmp.lt.u32.totalorder %s1088_s8, %s1134_s3 }
 0x151   : > { %p868_p10 = scmp.lt.u32.totalorder %s866_s26, %s862_s27  ;;  %p870_p2 = scmp.lt.u32.totalorder %s862_s27, %s1088_s8 }
 0x152   : > { %p864_p0 = pnand %p863_p1, %p1145_p9 }
 0x153   : > { %p869_p12 = por %p868_p10, %p867_p6 }
 0x154   : > { %p865_p5 = pneg %p864_p0 }
 0x155   : > { %p871_p3 = por %p870_p2, %p869_p12 }
 0x157   : > { %p872_p4 = pnand %p871_p3, %p865_p5 }
 0x159   : > { %875 = shalt.err (!%p872_p4)
}
 0x15a   : > { %724 = dma.vmem_to_hbm [thread:$0]  (%p1145_p9), %s1090_s10, 32, %s1088_s8, %s493_s11  }
 0x15b PF: > { %p740_p7 = scmp.ge.s32.totalorder %s918_s15, 2  ;;  %s534_s30 = sand.u32 1, %s906_s12  }
 0x15c   : > { %p1146_p8 = scmp.ne.s32.totalorder %s1139_s23, 0  ;;  %s535_s5 = scalar_lea.sflag [#allocation4], %s534_s30 }
 0x15e   : > { %p732_p11 = pnand %p740_p7, %p1146_p8 }
 0x160   : > { %897 = dma.done.wait (!%p732_p11), %s535_s5, 128  }
 0x161   : > { %899 = vsyncadd (!%p732_p11), %s535_s5, 4294967168  ;;  %s544_s6 = scalar_lea.sflag [#allocation7], %s534_s30 }
 0x162   : > { %901 = dma.done.wait (!%p732_p11), %s544_s6, 32  }
 0x163   : > { %903 = vsyncadd (!%p732_p11), %s544_s6, 4294967264  ;;  %p18_p9 = scmp.ge.s32.totalorder %s974_s18, 4   ;;  %s1147_s12 = smov %s910_s13 }
 0x164   : > { %s1148_s13 = smov %s914_s14  ;;  %s1149_s14 = smov %s985_s21 }
 0x165   : > { %s1150_s15 = smov %s974_s18  ;;  %20 = sbr.rel (!%p18_p9) target bundleno = 6 (0x6), region = 87 }
 0x16c   :  { %549 = vsyncpa [#allocation3], 1 }
 0x16d   :  { %551 = vsyncpa [#allocation3 + $0x1], 1 }
 0x16e   :  { %552 = vsyncpa [#allocation4], 1 }
 0x16f   :  { %554 = vsyncpa [#allocation4 + $0x1], 1 }
 0x170   :  { %555 = vsyncpa [#allocation7], 1 }
 0x171   :  { %557 = vsyncpa [#allocation7 + $0x1], 1 }

</bundles_post_ra>
